<compile_context>
chip_gen: v5e
topology: v5e:2x2
jax: 0.10.0
libtpu: 0.0.40
codegen_flags: <defaults>
</compile_context>

<pallas_src>
import jax
import jax.numpy as jnp
from jax.experimental import pallas as pl
from jax.experimental.pallas import tpu as pltpu


def _round_up(x, m):
    return (x + m - 1) // m * m


def _make_fused_kernel(tap_offs, cin, mp):
    """Cin < 128: one K = 9*Cin matmul over an im2col VMEM scratch."""

    def kernel(x_ref, w_ref, b_ref, o_ref, im_ref):
        # x_ref : [Cin, L]        flattened zero-padded image (compute dtype)
        # w_ref : [Cout, 9*Cin]   fused tap matrix (VMEM-resident across grid)
        # b_ref : [Cout, 1]       bias (f32)
        # o_ref : [Cout, Mp]      lane-padded output slab
        # im_ref: [9*Cin, Mp]     im2col scratch
        xr = jnp.maximum(x_ref[...], 0.0).astype(x_ref.dtype)   # ReLU, once
        for k, off in enumerate(tap_offs):                       # 9 static shifted copies
            im_ref[k * cin:(k + 1) * cin, :] = xr[:, off:off + mp]
        acc = jnp.dot(w_ref[...], im_ref[...],
                      preferred_element_type=jnp.float32)        # single MXU push
        o_ref[...] = (acc + b_ref[...]).astype(o_ref.dtype)

    return kernel


def _make_pertap_kernel(tap_offs, mp):
    """Cin >= 128: per-tap K = Cin matmuls (MXU already well fed)."""

    def kernel(x_ref, w_ref, b_ref, o_ref):
        # x_ref: [Cin, L]; w_ref: [9, Cout, Cin]; b_ref: [Cout, 1]; o_ref: [Cout, Mp]
        xr = jnp.maximum(x_ref[...], 0.0).astype(x_ref.dtype)    # ReLU hoisted
        acc = jnp.zeros(o_ref.shape, dtype=jnp.float32)
        for k, off in enumerate(tap_offs):
            acc = acc + jnp.dot(w_ref[k], xr[:, off:off + mp],
                                preferred_element_type=jnp.float32)
        o_ref[...] = (acc + b_ref[...]).astype(o_ref.dtype)

    return kernel


def conv_block_forward(x, weight, bias, *, compute_dtype=jnp.bfloat16):
    """Default-config ConvBlock forward: ReLU -> 3x3 conv (stride=1, pad=1) + bias.

    Args:
      x:      [N, Cin, H, W]    (NCHW, like the PyTorch module)
      weight: [Cout, Cin, 3, 3] (PyTorch Conv2d OIHW layout)
      bias:   [Cout]
    Returns:
      [N, Cout, H, W], dtype of x.
    """
    N, Cin, H, W = x.shape
    Cout, Cin_w, KH, KW = weight.shape
    assert Cin_w == Cin and (KH, KW) == (3, 3), "default ConvBlock uses a 3x3 conv"

    out_dtype = x.dtype
    cdt = compute_dtype

    wp = W + 2                              # padded width (1 left + 1 right)
    M = H * wp                              # real flattened output length per (n, cout)
    Mp = _round_up(M, 128)                  # lane-padded output length (full-width stores)
    max_off = (KH - 1) * wp + (KW - 1)      # largest static tap offset
    hp = -(-(max_off + Mp) // wp)           # padded rows so every shifted window is in-bounds
    L = hp * wp                             # flattened padded length per (n, cin)
    pad_bottom = hp - H - 1                 # 1 top row + pad_bottom zero rows at the bottom

    # One XLA zero-pad + free reshape; channel-major NCHW layout is preserved.
    xp = jnp.pad(x, ((0, 0), (0, 0), (1, pad_bottom), (1, 1)))
    xf = xp.reshape(N, Cin, L).astype(cdt)
    bt = bias.reshape(Cout, 1).astype(jnp.float32)

    tap_offs = tuple(ky * wp + kx for ky in range(KH) for kx in range(KW))
    fuse = Cin < 128

    if fuse:
        # [Cout, 9*Cin] with K ordered (ky, kx, cin) to match the im2col scratch rows.
        w_arg = jnp.transpose(weight, (0, 2, 3, 1)).reshape(Cout, KH * KW * Cin).astype(cdt)
        kernel = _make_fused_kernel(tap_offs, Cin, Mp)
        w_spec = pl.BlockSpec((Cout, KH * KW * Cin), lambda n: (0, 0))
        scratch_shapes = [pltpu.VMEM((KH * KW * Cin, Mp), cdt)]
    else:
        w_arg = jnp.transpose(weight, (2, 3, 0, 1)).reshape(KH * KW, Cout, Cin).astype(cdt)
        kernel = _make_pertap_kernel(tap_offs, Mp)
        w_spec = pl.BlockSpec((KH * KW, Cout, Cin), lambda n: (0, 0, 0))
        scratch_shapes = []

    # Generation-aware VMEM limit with headroom for Mosaic internal scratch.
    c_isz = jnp.dtype(cdt).itemsize
    o_isz = jnp.dtype(out_dtype).itemsize
    blk_bytes = 2 * (Cin * L * c_isz + Cout * Mp * o_isz)        # double-buffered in/out
    scratch_bytes = (KH * KW * Cin * Mp * c_isz) if fuse else 0
    const_bytes = 2 * (w_arg.size * c_isz + bt.size * 4)
    need = blk_bytes + scratch_bytes + const_bytes + (4 << 20)
    try:
        vmem_cap = int(pltpu.get_tpu_info().vmem_capacity_bytes)
    except Exception:
        vmem_cap = 64 << 20
    vmem_limit = int(max(min(max(need, 32 << 20), vmem_cap - (6 << 20)), 16 << 20))

    cost = pl.CostEstimate(
        flops=2 * N * KH * KW * Cin * Cout * Mp,
        transcendentals=0,
        bytes_accessed=int(xf.size * c_isz + w_arg.size * c_isz
                           + bt.size * 4 + N * Cout * Mp * o_isz),
    )

    out_f = pl.pallas_call(
        kernel,
        out_shape=jax.ShapeDtypeStruct((N, Cout, Mp), out_dtype),
        grid_spec=pltpu.PrefetchScalarGridSpec(
            num_scalar_prefetch=0,
            grid=(N,),
            in_specs=[
                pl.BlockSpec((None, Cin, L), lambda n: (n, 0, 0)),
                w_spec,
                pl.BlockSpec((Cout, 1), lambda n: (0, 0)),
            ],
            out_specs=pl.BlockSpec((None, Cout, Mp), lambda n: (n, 0, 0)),
            scratch_shapes=scratch_shapes,
        ),
        compiler_params=pltpu.CompilerParams(
            dimension_semantics=("parallel",),
            vmem_limit_bytes=vmem_limit,
        ),
        cost_estimate=cost,
    )(xf, w_arg, bt)

    # Drop lane-padding / scratch columns; result is already NCHW.
    return out_f[:, :, :M].reshape(N, Cout, H, wp)[:, :, :, :W]


if __name__ == "__main__":
    key = jax.random.PRNGKey(0)
    kx, kw_, kb = jax.random.split(key, 3)

    N, Cin, H, W = 2, 4, 16, 16
    Cout = 8

    def bf16_exact(a):
        # Round test data to bf16-representable values so the bf16 operand cast
        # inside the wrapper is lossless and the comparison vs the f32 XLA
        # reference only sees accumulation-order noise.
        return a.astype(jnp.bfloat16).astype(jnp.float32)

    x = bf16_exact(jax.random.normal(kx, (N, Cin, H, W), dtype=jnp.float32))
    w = bf16_exact(0.1 * jax.random.normal(kw_, (Cout, Cin, 3, 3), dtype=jnp.float32))
    b = bf16_exact(jax.random.normal(kb, (Cout,), dtype=jnp.float32))

    out = jax.block_until_ready(conv_block_forward(x, w, b))

    # Reference: ReLU -> conv2d(3x3, pad=1, stride=1) + bias, pure XLA.
    xr = jnp.maximum(x, 0.0)
    ref = jax.lax.conv_general_dilated(
        xr, w, window_strides=(1, 1), padding=((1, 1), (1, 1)),
        dimension_numbers=("NCHW", "OIHW", "NCHW"),
        preferred_element_type=jnp.float32,
    ).astype(x.dtype) + b[None, :, None, None]

    assert out.shape == (N, Cout, H, W)
    err = float(jnp.max(jnp.abs(out - ref)))
    assert err < 1e-3, err

    print("KERNEL_OK")
</pallas_src>

<mosaic_0001>
module attributes {stable_mosaic.version = 11 : i64} {
  func.func @kernel(%arg0: i32, %arg1: memref<1x4x432xbf16, #tpu.memory_space<vmem>>, %arg2: memref<8x36xbf16, #tpu.memory_space<vmem>>, %arg3: memref<8x1xf32, #tpu.memory_space<vmem>>, %arg4: memref<1x8x384xf32, #tpu.memory_space<vmem>>, %arg5: memref<36x384xbf16, #tpu.memory_space<vmem>>) attributes {dimension_semantics = [#tpu.dimension_semantics<parallel>], iteration_bounds = array<i64: 2>, scalar_prefetch = 0 : i64, scratch_operands = 1 : i64, tpu.core_type = #tpu.core_type<tc>, window_params = [{transform_indices = @transform_0, window_bounds = array<i64: 1, 4, 432>}, {pipeline_mode = #tpu.pipeline_mode<synchronous>, transform_indices = @transform_1, window_bounds = array<i64: 8, 36>}, {pipeline_mode = #tpu.pipeline_mode<synchronous>, transform_indices = @transform_2, window_bounds = array<i64: 8, 1>}, {transform_indices = @transform_3, window_bounds = array<i64: 1, 8, 384>}]} {
    %c0 = arith.constant 0 : index
    %c0_0 = arith.constant 0 : index
    %c0_1 = arith.constant 0 : index
    %0 = vector.load %arg1[%c0, %c0_0, %c0_1] : memref<1x4x432xbf16, #tpu.memory_space<vmem>>, vector<1x4x432xbf16>
    %1 = vector.shape_cast %0 : vector<1x4x432xbf16> to vector<4x432xbf16>
    %cst = arith.constant 0.000000e+00 : bf16
    %2 = vector.broadcast %cst : bf16 to vector<4x432xbf16>
    %3 = arith.maximumf %1, %2 : vector<4x432xbf16>
    %4 = vector.extract_strided_slice %3 {offsets = [0, 0], sizes = [4, 384], strides = [1, 1]} : vector<4x432xbf16> to vector<4x384xbf16>
    %c0_2 = arith.constant 0 : index
    %c0_3 = arith.constant 0 : index
    %5 = vector.load %arg5[%c0_2, %c0_3] : memref<36x384xbf16, #tpu.memory_space<vmem>>, vector<4x384xbf16>
    tpu.vector_store %arg5[%c0_2, %c0_3], %4 {strides = array<i32>} : memref<36x384xbf16, #tpu.memory_space<vmem>>, vector<4x384xbf16>,
    %6 = vector.extract_strided_slice %3 {offsets = [0, 1], sizes = [4, 384], strides = [1, 1]} : vector<4x432xbf16> to vector<4x384xbf16>
    %c4 = arith.constant 4 : index
    %c0_4 = arith.constant 0 : index
    %7 = vector.load %arg5[%c4, %c0_4] : memref<36x384xbf16, #tpu.memory_space<vmem>>, vector<4x384xbf16>
    tpu.vector_store %arg5[%c4, %c0_4], %6 {strides = array<i32>} : memref<36x384xbf16, #tpu.memory_space<vmem>>, vector<4x384xbf16>,
    %8 = vector.extract_strided_slice %3 {offsets = [0, 2], sizes = [4, 384], strides = [1, 1]} : vector<4x432xbf16> to vector<4x384xbf16>
    %c8 = arith.constant 8 : index
    %c0_5 = arith.constant 0 : index
    %9 = vector.load %arg5[%c8, %c0_5] : memref<36x384xbf16, #tpu.memory_space<vmem>>, vector<4x384xbf16>
    tpu.vector_store %arg5[%c8, %c0_5], %8 {strides = array<i32>} : memref<36x384xbf16, #tpu.memory_space<vmem>>, vector<4x384xbf16>,
    %10 = vector.extract_strided_slice %3 {offsets = [0, 18], sizes = [4, 384], strides = [1, 1]} : vector<4x432xbf16> to vector<4x384xbf16>
    %c12 = arith.constant 12 : index
    %c0_6 = arith.constant 0 : index
    %11 = vector.load %arg5[%c12, %c0_6] : memref<36x384xbf16, #tpu.memory_space<vmem>>, vector<4x384xbf16>
    tpu.vector_store %arg5[%c12, %c0_6], %10 {strides = array<i32>} : memref<36x384xbf16, #tpu.memory_space<vmem>>, vector<4x384xbf16>,
    %12 = vector.extract_strided_slice %3 {offsets = [0, 19], sizes = [4, 384], strides = [1, 1]} : vector<4x432xbf16> to vector<4x384xbf16>
    %c16 = arith.constant 16 : index
    %c0_7 = arith.constant 0 : index
    %13 = vector.load %arg5[%c16, %c0_7] : memref<36x384xbf16, #tpu.memory_space<vmem>>, vector<4x384xbf16>
    tpu.vector_store %arg5[%c16, %c0_7], %12 {strides = array<i32>} : memref<36x384xbf16, #tpu.memory_space<vmem>>, vector<4x384xbf16>,
    %14 = vector.extract_strided_slice %3 {offsets = [0, 20], sizes = [4, 384], strides = [1, 1]} : vector<4x432xbf16> to vector<4x384xbf16>
    %c20 = arith.constant 20 : index
    %c0_8 = arith.constant 0 : index
    %15 = vector.load %arg5[%c20, %c0_8] : memref<36x384xbf16, #tpu.memory_space<vmem>>, vector<4x384xbf16>
    tpu.vector_store %arg5[%c20, %c0_8], %14 {strides = array<i32>} : memref<36x384xbf16, #tpu.memory_space<vmem>>, vector<4x384xbf16>,
    %16 = vector.extract_strided_slice %3 {offsets = [0, 36], sizes = [4, 384], strides = [1, 1]} : vector<4x432xbf16> to vector<4x384xbf16>
    %c24 = arith.constant 24 : index
    %c0_9 = arith.constant 0 : index
    %17 = vector.load %arg5[%c24, %c0_9] : memref<36x384xbf16, #tpu.memory_space<vmem>>, vector<4x384xbf16>
    tpu.vector_store %arg5[%c24, %c0_9], %16 {strides = array<i32>} : memref<36x384xbf16, #tpu.memory_space<vmem>>, vector<4x384xbf16>,
    %18 = vector.extract_strided_slice %3 {offsets = [0, 37], sizes = [4, 384], strides = [1, 1]} : vector<4x432xbf16> to vector<4x384xbf16>
    %c28 = arith.constant 28 : index
    %c0_10 = arith.constant 0 : index
    %19 = vector.load %arg5[%c28, %c0_10] : memref<36x384xbf16, #tpu.memory_space<vmem>>, vector<4x384xbf16>
    tpu.vector_store %arg5[%c28, %c0_10], %18 {strides = array<i32>} : memref<36x384xbf16, #tpu.memory_space<vmem>>, vector<4x384xbf16>,
    %20 = vector.extract_strided_slice %3 {offsets = [0, 38], sizes = [4, 384], strides = [1, 1]} : vector<4x432xbf16> to vector<4x384xbf16>
    %c32 = arith.constant 32 : index
    %c0_11 = arith.constant 0 : index
    %21 = vector.load %arg5[%c32, %c0_11] : memref<36x384xbf16, #tpu.memory_space<vmem>>, vector<4x384xbf16>
    tpu.vector_store %arg5[%c32, %c0_11], %20 {strides = array<i32>} : memref<36x384xbf16, #tpu.memory_space<vmem>>, vector<4x384xbf16>,
    %c0_12 = arith.constant 0 : index
    %c0_13 = arith.constant 0 : index
    %22 = vector.load %arg2[%c0_12, %c0_13] : memref<8x36xbf16, #tpu.memory_space<vmem>>, vector<8x36xbf16>
    %c0_14 = arith.constant 0 : index
    %c0_15 = arith.constant 0 : index
    %23 = vector.load %arg5[%c0_14, %c0_15] : memref<36x384xbf16, #tpu.memory_space<vmem>>, vector<36x384xbf16>
    %cst_16 = arith.constant dense<0.000000e+00> : vector<8x384xf32>
    %24 = tpu.matmul %22, %23, %cst_16 {dimension_numbers = #tpu.dot_dimension_numbers<[1], [0], [0], [1], [0, 0, 1, 1], [], []>} : vector<8x36xbf16>, vector<36x384xbf16>, vector<8x384xf32> -> vector<8x384xf32>
    %c0_17 = arith.constant 0 : index
    %c0_18 = arith.constant 0 : index
    %25 = vector.load %arg3[%c0_17, %c0_18] : memref<8x1xf32, #tpu.memory_space<vmem>>, vector<8x1xf32>
    %26 = vector.broadcast %25 : vector<8x1xf32> to vector<8x384xf32>
    %27 = arith.addf %24, %26 : vector<8x384xf32>
    %c0_19 = arith.constant 0 : index
    %c0_20 = arith.constant 0 : index
    %c0_21 = arith.constant 0 : index
    %28 = vector.load %arg4[%c0_19, %c0_20, %c0_21] : memref<1x8x384xf32, #tpu.memory_space<vmem>>, vector<1x8x384xf32>
    %29 = vector.shape_cast %28 : vector<1x8x384xf32> to vector<8x384xf32>
    %30 = vector.shape_cast %27 : vector<8x384xf32> to vector<1x8x384xf32>
    tpu.vector_store %arg4[%c0_19, %c0_20, %c0_21], %30 {strides = array<i32>} : memref<1x8x384xf32, #tpu.memory_space<vmem>>, vector<1x8x384xf32>,
    return
  }
  func.func @transform_0(%arg0: i32) -> (i32, i32, i32) {
    %c0_i32 = arith.constant 0 : i32
    %c0_i32_0 = arith.constant 0 : i32
    %c0_i32_1 = arith.constant 0 : i32
    return %arg0, %c0_i32, %c0_i32_0 : i32, i32, i32
  }
  func.func @transform_1(%arg0: i32) -> (i32, i32) {
    %c0_i32 = arith.constant 0 : i32
    %c0_i32_0 = arith.constant 0 : i32
    %c0_i32_1 = arith.constant 0 : i32
    return %c0_i32, %c0_i32_0 : i32, i32
  }
  func.func @transform_2(%arg0: i32) -> (i32, i32) {
    %c0_i32 = arith.constant 0 : i32
    %c0_i32_0 = arith.constant 0 : i32
    %c0_i32_1 = arith.constant 0 : i32
    return %c0_i32, %c0_i32_0 : i32, i32
  }
  func.func @transform_3(%arg0: i32) -> (i32, i32, i32) {
    %c0_i32 = arith.constant 0 : i32
    %c0_i32_0 = arith.constant 0 : i32
    %c0_i32_1 = arith.constant 0 : i32
    return %arg0, %c0_i32, %c0_i32_0 : i32, i32, i32
  }
}

</mosaic_0001>

<bundles_post_ra>
// kernel: tpu_custom_call.1
= control target key start
LH: loop header
LB: loop body
LE: loop exit
PB: predicated region body
PF: predicated region fallthrough
CT: control target
= control target key end

     0   :  { %8 = vsyncpa [#allocation4], 0  ;;  %s936_s0 = inlined_call_operand.hbm [shape: bf16[2,4,432], index: 0, kind: input, shape index: {}]   ;;  %s937_s1 = inlined_call_operand.vmem [shape: bf16[8,36], index: 1, kind: input, shape index: {}]   ;;  %s938_s2 = inlined_call_operand.vmem [shape: f32[8,1], index: 2, kind: input, shape index: {}]   ;;  %s939_s3 = inlined_call_operand.hbm [shape: f32[2,8,384], index: 3, kind: output, shape index: {}]  }
   0x1   :  { %10 = vsyncpa [#allocation4 + $0x1], 0 }
   0x2   :  { %11 = vsyncpa [#allocation5], 0 }
   0x3   :  { %13 = vsyncpa [#allocation5 + $0x1], 0  ;;  %s760_s12 = smov 0   ;;  %s762_s13 = smov 0  }
   0x4   :  { %s764_s14 = smov 0   ;;  %s766_s15 = smov 0  }
   0x5 LB: > { %s781_s16 = sadd.s32 4294967295, %s729_s15   ;;  %s529_s17 = sadd.s32 4294967294, %s729_s15   ;;  %s729_s15 = sphi %s766_s15, %s949_s15   ;;  %s725_s14 = sphi %s764_s14, %s948_s14   ;;  %s721_s13 = sphi %s762_s13, %s947_s13   ;;  %s717_s12 = sphi %s760_s12, %s946_s12  }
   0x6   : > { %s785_s18 = sadd.s32 1, %s729_s15   ;;  %s26_s19 = sadd.s32 1, %s725_s14 }
   0x7   : > { %s23_s20 = ssub.s32 %s729_s15, %s785_s18  ;;  %p33_p0 = scmp.ne.s32.totalorder %s725_s14, %s721_s13 }
   0x8   : > { %p24_p1 = scmp.eq.s32.totalorder %s23_s20, 0  ;;  %p34_p2 = scmp.eq.s32.totalorder %s729_s15, 0 }
   0x9   : > { %p39_p3 = scmp.ne.s32.totalorder %s721_s13, %s717_s12  ;;  %p40_p4 = scmp.eq.s32.totalorder %s781_s16, 0 }
   0xa   : > { %s797_s21 = scalar_select %p24_p1, %s725_s14, %s26_s19  }
   0xb   : > { %p799_p5 = por %p34_p2, %p33_p0  ;;  %p803_p6 = por %p40_p4, %p39_p3 }
   0xc   : > { %p105_p7 = scmp.eq.s32.totalorder %s781_s16, 1  ;;  %p111_p8 = scmp.eq.s32.totalorder %s529_s17, 1 }
   0xd   : > { %p588_p10 = scmp.lt.s32.totalorder %s729_s15, 2  ;;  %s137_s26 = sand.u32 1, %s725_s14  }
   0xe   : > { %p810_p11 = por %p105_p7, %p33_p0  ;;  %p814_p12 = por %p111_p8, %p39_p3 }
   0xf   : > { %s567_s27 = sshll.u32 %s729_s15, 3  ;;  %s532_s28 = sshll.u32 %s137_s26, 3 }
  0x10   : > { %s146_s4 = scalar_lea.hbm %s936_s0, %s567_s27  ;;  %s141_s6 = scalar_lea.vmem [#allocation3], %s532_s28 }
  0x11   : > { %s148_s5 = sshll.u32 %s146_s4, 4  ;;  %s150_s7 = sshll.u32 %s141_s6, 4  ;;  %s149_s5 = int_to_ptr.hbm [resolvable:$true] %s148_s5  ;;  %s151_s7 = int_to_ptr.vmem [resolvable:$true] %s150_s7 }
  0x12   : > { %p825_p13 = pnand %p588_p10, %p799_p5  ;;  %p535_p0 = scmp.ge.s32.totalorder %s729_s15, 1 }
  0x13   : > { %p155_p1 = scmp.lt.s32.totalorder %s729_s15, 3  ;;  %s138_s9 = scalar_lea.sflag [#allocation4], %s137_s26 }
  0x14   : > { %s633_s10 = sshra.s32 %s149_s5, 4  ;;  %p637_p3 = pneg %p825_p13  ;;  %s634_s10 = int_to_ptr.hbm [resolvable:$true] %s633_s10 }
  0x15   : > { %s635_s11 = scalar_lea.hbm %s634_s10, 8  ;;  %s640_s20 = scalar_lea.hbm %s936_s0, 16 }
  0x16   : > { %p636_p2 = scmp.ne.s32.totalorder %s634_s10, %s635_s11  ;;  %p641_p5 = scmp.lt.s32.totalorder %s634_s10, %s936_s0 }
  0x17   : > { %p642_p8 = scmp.lt.s32.totalorder %s640_s20, %s635_s11 }
  0x18   : > { %p638_p4 = pnand %p637_p3, %p636_p2 }
  0x19   : > { %p643_p10 = por %p642_p8, %p641_p5 }
  0x1a   : > { %p639_p7 = pneg %p638_p4 }
  0x1c   : > { %p644_p9 = pnand %p643_p10, %p639_p7 }
  0x1e   : > { %647 = shalt.err (!%p644_p9)
}
  0x1f   : > { %583 = dma.hbm_to_vmem [thread:$0]  (!%p825_p13), %s149_s5, 128, %s151_s7, %s138_s9  }
  0x20   : > { %p156_p2 = pnand %p535_p0, %p155_p1 }
  0x21   : > { %s846_s26 = sand.u32 (!%p156_p2), 1, %s721_s13  }
  0x22   : > { %159 = sbr.rel (%p156_p2) target bundleno = 361 (0x169), region = 32  ;;  %s536_s28 = sshll.u32 (!%p156_p2), %s846_s26, 3 }
  0x23   : > { %s162_s29 = scalar_lea.sflag (!%p156_p2), [#allocation4], %s846_s26  ;;  %s165_s30 = scalar_lea.vmem (!%p156_p2), [#allocation3], %s536_s28 }
  0x27   : > { %708 = dma.done.wait (%p803_p6), %s162_s29, 128  }
  0x28   : > { %710 = vsyncadd (%p803_p6), %s162_s29, 4294967168  ;;  %v190_v0 = vld [vmem:[%s165_s30] sm:$0xff]  ;;  %s731_s4 = smov 109   ;;  %s732_s5 = smov 90   ;;  %vm294_vm0 = vcmask 752640   ;;  %vm222_vm1 = vcmask 1043456  }
  0x29   : > { %v192_v1 = vunpack.c.h.bf16 %v190_v0  ;;  %v191_v2 = vunpack.c.l.bf16 %v190_v0  ;;  %s733_s23 = smov 92   ;;  %s734_s6 = smov 126   ;;  %vm308_vm2 = vcmask 744448   ;;  %vm266_vm3 = vcmask 891904  }
  0x2a   : > { %s735_s7 = smov 108   ;;  %s736_s8 = smov 91   ;;  %vm322_vm4 = vcmask 736256   ;;  %vm252_vm5 = vcmask 900096   ;;  %vm238_vm6 = vcmask 1031168   ;;  %vm390_vm7 = vcmask 1041408  }
  0x2b   : > { %v194_v3 = vmax.f32 %v192_v1, 0.0  ;;  %v193_v4 = vmax.f32 %v191_v2, 0.0  ;;  %s737_s9 = smov 127   ;;  %s738_s10 = smov 110   ;;  %vm280_vm8 = vcmask 883712   ;;  %vm224_vm9 = vcmask 1039360  }
  0x2c   : > { %v340_v1 = vld [vmem:[%s938_s2] sm:$0xff]  ;;  %vm386_vm10 = vcmask 293888   ;;  %s574_s22 = smul.u32 24, %s846_s26 }
  0x2d   : > { %199 = vst [vmem:[#allocation1 + $0x10] ss:$2 sm:$0xff] %v194_v3  ;;  %s575_s28 = smul.u32 24, %s781_s16 }
  0x2e   : > { %197 = vst [vmem:[#allocation1] ss:$2 sm:$0xff] %v193_v4  ;;  %s188_s27 = scalar_lea.vmem [#allocation6], %s574_s22 }
  0x34   : > { %v202_v5 = vld.sshfl [vmem:[#allocation1 + $0x10] sm:$0xff pattern:$0x75316420]  ;;  %v203_v6 = vld.sshfl [vmem:[#allocation1 + $0x18] sm:$0xff pattern:$0x75316420] }
  0x35   : > { %v209_v7 = vpack.c.bf16 %v203_v6, %v202_v5  ;;  %v200_v8 = vld.sshfl [vmem:[#allocation1] sm:$0xff pattern:$0x75316420]  ;;  %v201_v9 = vld.sshfl [vmem:[#allocation1 + $0x8] sm:$0xff pattern:$0x75316420] }
  0x36   : > { %v208_v10 = vpack.c.bf16 %v201_v9, %v200_v8  ;;  %v739_v6 = vmov 0  }
  0x37   : > { %261 = vrot.lane.b32.xlu1 %v209_v7, %s731_s4  ;;  %211 = vst [vmem:[#allocation2 + $0x8] sm:$0x3] %v209_v7  ;;  %317 = vrot.lane.b32.xlu0 %v209_v7, %s732_s5  ;;  %v215_v11 = vrot.slane %v209_v7, 6 }
  0x38   : > { %289 = vrot.lane.b32.xlu2 %v209_v7, %s733_s23  ;;  %210 = vst [vmem:[#allocation2] sm:$0x33] %v208_v10  ;;  %v214_v12 = vrot.slane %v208_v10, 6  ;;  %631 = vset.pattern.permute.xlu1 %v739_v6 }
  0x39   : > { %632 = vset.pattern.permute.xlu0 %v739_v6 }
  0x3f   : > { %233 = vrot.lane.b32.xlu1 %v209_v7, %s734_s6  ;;  %315 = vrot.lane.b32.xlu0 %v208_v10, %s732_s5  ;;  %s456_s5 = sshll.u32 %s188_s27, 4  ;;  %s457_s5 = int_to_ptr.vmem [resolvable:$true] %s456_s5 }
  0x40   : > { %287 = vrot.lane.b32.xlu2 %v208_v10, %s733_s23 }
  0x47   : > { %275 = vrot.lane.b32.xlu1 %v215_v11, %s735_s7  ;;  %259 = vrot.lane.b32.xlu0 %v208_v10, %s731_s4  ;;  %s454_s4 = scalar_lea.hbm %s939_s3, %s575_s28 }
  0x48   : > { %303 = vrot.lane.b32.xlu2 %v215_v11, %s736_s8  ;;  %s458_s23 = sshll.u32 %s454_s4, 4  ;;  %s459_s23 = int_to_ptr.hbm [resolvable:$true] %s458_s23 }
  0x4f   : > { %218 = vrot.lane.b32.xlu0 %v215_v11, %s737_s9  ;;  %273 = vrot.lane.b32.xlu1 %v214_v12, %s735_s7  ;;  %s677_s7 = sshra.s32 %s459_s23, 4  ;;  %s678_s7 = int_to_ptr.hbm [resolvable:$true] %s677_s7 }
  0x50   : > { %247 = vrot.lane.b32.xlu2 %v215_v11, %s738_s10  ;;  %s679_s16 = scalar_lea.hbm %s678_s7, 24  ;;  %p684_p0 = scmp.lt.s32.totalorder %s678_s7, %s939_s3 }
  0x51   : > { %p680_p6 = scmp.ne.s32.totalorder %s678_s7, %s679_s16 }
  0x53   : > { %p681_p9 = pnand %p680_p6, %p810_p11 }
  0x55   : > { %p682_p13 = pneg %p681_p9 }
  0x57   : > { %301 = vrot.lane.b32.xlu0 %v214_v12, %s736_s8  ;;  %216 = vrot.lane.b32.xlu1 %v214_v12, %s737_s9 }
  0x58   : > { %231 = vrot.lane.b32.xlu2 %v208_v10, %s734_s6  ;;  %s443_s6 = scalar_lea.sflag [#allocation5], %s846_s26 }
  0x5f   : > { %245 = vrot.lane.b32.xlu0 %v214_v12, %s738_s10  ;;  %343 = vperm.xlu1 %631, %v340_v1   ;;  %s683_s10 = scalar_lea.hbm %s939_s3, 48 }
  0x60   : > { %p685_p1 = scmp.lt.s32.totalorder %s683_s10, %s679_s16 }
  0x62   : > { %p686_p3 = por %p685_p1, %p684_p0 }
  0x64   : > { %p687_p4 = pnand %p686_p3, %p682_p13 }
  0x92   : > { %v290_v13 = vpop.permute.xlu2 %289 }
  0x93   : > { %v292_v14 = vrot.slane %v290_v13, 4 }
  0x95   : > { %v296_v15 = vsel %vm294_vm0, %v290_v13, %v292_v14 }
  0x96   : > { %300 = vst [vmem:[#allocation2 + $0x2c] sm:$0x3] %v296_v15 }
  0x9a   : > { %v288_v16 = vpop.permute.xlu2 %287 }
  0x9b   : > { %v291_v17 = vrot.slane %v288_v16, 4 }
  0x9d   : > { %v293_v18 = vsel %vm222_vm1, %v291_v17, %v292_v14 }
  0x9e   : > { %v295_v19 = vsel %vm294_vm0, %v288_v16, %v293_v18 }
  0x9f   : > { %299 = vst [vmem:[#allocation2 + $0x24] sm:$0x33] %v295_v19 }
  0xa2   : > { %v855_v20 = vpop.permute.xlu2 %303 }
  0xa3   : > { %v306_v21 = vrot.slane %v855_v20, 4 }
  0xa5   : > { %v310_v22 = vsel %vm308_vm2, %v855_v20, %v306_v21 }
  0xa6   : > { %314 = vst [vmem:[#allocation2 + $0x2c] sm:$0xc] %v310_v22  ;;  %v329_v22 = vld [vmem:[%s937_s1] sm:$0xf] }
  0xa9   : > { %v262_v23 = vpop.permute.xlu1 %261  ;;  %v318_v24 = vpop.permute.xlu0 %317 }
  0xaa   : > { %v264_v25 = vrot.slane %v262_v23, 4  ;;  %v320_v26 = vrot.slane %v318_v24, 4  ;;  %v862_v27 = vpop.permute.xlu2 %247 }
  0xab   : > { %v250_v28 = vrot.slane %v862_v27, 4 }
  0xac   : > { %v268_v29 = vsel %vm266_vm3, %v262_v23, %v264_v25  ;;  %v324_v30 = vsel %vm322_vm4, %v318_v24, %v320_v26 }
  0xad   : > { %272 = vst [vmem:[#allocation2 + $0x20] sm:$0x3] %v268_v29  ;;  %v254_v31 = vsel %vm252_vm5, %v862_v27, %v250_v28  ;;  %v573_v5 = vld [vmem:[#allocation2 + $0x28] sm:$0xf0] }
  0xae   : > { %328 = vst [vmem:[#allocation2 + $0x38] sm:$0x3] %v324_v30 }
  0xaf   : > { %258 = vst [vmem:[#allocation2 + $0x14] sm:$0xc] %v254_v31 }
  0xb1   : > { %v234_v32 = vpop.permute.xlu1 %233  ;;  %v316_v33 = vpop.permute.xlu0 %315 }
  0xb2   : > { %v236_v34 = vrot.slane %v234_v32, 4  ;;  %v319_v35 = vrot.slane %v316_v33, 4  ;;  %v232_v36 = vpop.permute.xlu2 %231 }
  0xb3   : > { %v235_v37 = vrot.slane %v232_v36, 4 }
  0xb4   : > { %v240_v38 = vsel %vm238_vm6, %v234_v32, %v236_v34  ;;  %v321_v39 = vsel %vm222_vm1, %v319_v35, %v320_v26 }
  0xb5   : > { %244 = vst [vmem:[#allocation2 + $0x14] sm:$0x3] %v240_v38  ;;  %v323_v40 = vsel %vm322_vm4, %v316_v33, %v321_v39  ;;  %v237_v41 = vsel %vm222_vm1, %v235_v37, %v236_v34  ;;  %v339_v42 = vld [vmem:[#allocation2 + $0x38] sm:$0x3] }
  0xb6   : > { %327 = vst [vmem:[#allocation2 + $0x30] sm:$0x33] %v323_v40  ;;  %v239_v43 = vsel %vm238_vm6, %v232_v36, %v237_v41  ;;  %v370_v44 = vunpack.c.l.b16 %v339_v42 }
  0xb7   : > { %243 = vst [vmem:[#allocation2 + $0xc] sm:$0x33] %v239_v43 }
  0xb8   : > { %v379_v45 = vpack.c.b16 %v370_v44, %v370_v44 }
  0xb9   : > { %v276_v46 = vpop.permute.xlu1 %275  ;;  %v260_v47 = vpop.permute.xlu0 %259 }
  0xba   : > { %v278_v48 = vrot.slane %v276_v46, 4  ;;  %v263_v49 = vrot.slane %v260_v47, 4  ;;  %v398_v50 = vsel %vm390_vm7, %v379_v45, 0 }
  0xbb   : > { %431 = vmatpush.bf16.msra.mxu2 %v398_v50 }
  0xbc   : > { %v282_v51 = vsel %vm280_vm8, %v276_v46, %v278_v48  ;;  %v265_v52 = vsel %vm222_vm1, %v263_v49, %v264_v25  ;;  %v570_v16 = vld [vmem:[#allocation2 + $0x10] sm:$0xf0] }
  0xbd   : > { %286 = vst [vmem:[#allocation2 + $0x20] sm:$0xc] %v282_v51  ;;  %v267_v53 = vsel %vm266_vm3, %v260_v47, %v265_v52  ;;  %v338_v54 = vld [vmem:[#allocation2 + $0x30] sm:$0x33] }
  0xbe   : > { %271 = vst [vmem:[#allocation2 + $0x18] sm:$0x33] %v267_v53  ;;  %v368_v55 = vunpack.c.l.b16 %v338_v54  ;;  %v369_v56 = vunpack.c.h.b16 %v338_v54 }
  0xc0   : > { %v377_v57 = vpack.c.b16 %v368_v55, %v368_v55  ;;  %v378_v58 = vpack.c.b16 %v369_v56, %v369_v56 }
  0xc1   : > { %v219_v59 = vpop.permute.xlu0 %218  ;;  %v274_v60 = vpop.permute.xlu1 %273 }
  0xc2   : > { %v221_v61 = vrot.slane %v219_v59, 4  ;;  %v277_v62 = vrot.slane %v274_v60, 4  ;;  %v392_v63 = vsel %vm390_vm7, %v377_v57, 0  ;;  %v395_v0 = vsel %vm390_vm7, %v378_v58, 0 }
  0xc3   : > { %405 = vmatpush.bf16.msra.mxu0 %v392_v63  ;;  %418 = vmatpush.bf16.msra.mxu1 %v395_v0 }
  0xc4   : > { %v226_v2 = vsel %vm224_vm9, %v219_v59, %v221_v61  ;;  %v279_v3 = vsel %vm222_vm1, %v277_v62, %v278_v48  ;;  %v559_v4 = vld [vmem:[#allocation2 + $0x20] sm:$0xf] }
  0xc5   : > { %230 = vst [vmem:[#allocation2 + $0x8] sm:$0xc] %v226_v2  ;;  %v281_v7 = vsel %vm280_vm8, %v274_v60, %v279_v3  ;;  %v560_v8 = vor.u32 %v573_v5, %v559_v4 }
  0xc6   : > { %285 = vst [vmem:[#allocation2 + $0x18] sm:$0xcc] %v281_v7 }
  0xc7   : > { %432 = vmatpush.bf16.msra.mxu2 %v560_v8 }
  0xc9   : > { %v302_v9 = vpop.permute.xlu0 %301  ;;  %v217_v10 = vpop.permute.xlu1 %216 }
  0xca   : > { %v305_v11 = vrot.slane %v302_v9, 4  ;;  %v220_v12 = vrot.slane %v217_v10, 4 }
  0xcc   : > { %v307_v13 = vsel %vm222_vm1, %v305_v11, %v306_v21  ;;  %v223_v14 = vsel %vm222_vm1, %v220_v12, %v221_v61  ;;  %v547_v15 = vld [vmem:[#allocation2 + $0x8] sm:$0xf] }
  0xcd   : > { %v309_v17 = vsel %vm308_vm2, %v302_v9, %v307_v13  ;;  %v225_v18 = vsel %vm224_vm9, %v217_v10, %v223_v14  ;;  %v548_v19 = vor.u32 %v570_v16, %v547_v15  ;;  %v551_v24 = vld [vmem:[#allocation2 + $0x18] sm:$0xf]  ;;  %v571_v29 = vld [vmem:[#allocation2 + $0x1c] sm:$0xf] }
  0xce   : > { %313 = vst [vmem:[#allocation2 + $0x24] sm:$0xcc] %v309_v17 }
  0xcf   : > { %229 = vst [vmem:[#allocation2] sm:$0xcc] %v225_v18  ;;  %433 = vmatpush.bf16.msra.mxu2 %v548_v19 }
  0xd1   : > { %v246_v20 = vpop.permute.xlu0 %245 }
  0xd2   : > { %v249_v23 = vrot.slane %v246_v20, 4  ;;  %563 = vmatmul.msk.bf16.vlgmr.msra.gmra.mxu2 %vm386_vm10, %v329_v22 }
  0xd4   : > { %v251_v21 = vsel %vm222_vm1, %v249_v23, %v250_v28  ;;  %v344_v28 = vpop.permute.xlu1 %343 }
  0xd5   : > { %v253_v25 = vsel %vm252_vm5, %v246_v20, %v251_v21  ;;  %v572_v26 = vld [vmem:[#allocation2 + $0x20] sm:$0xf0]  ;;  %v553_v30 = vld [vmem:[#allocation2 + $0x24] sm:$0xf0] }
  0xd6   : > { %257 = vst [vmem:[#allocation2 + $0xc] sm:$0xcc] %v253_v25  ;;  %v552_v31 = vor.u32 %v572_v26, %v551_v24  ;;  %v556_v32 = vor.u32 %v571_v29, %v553_v30  ;;  %v539_v33 = vld [vmem:[#allocation2] sm:$0xf]  ;;  %v568_v35 = vld [vmem:[#allocation2 + $0x4] sm:$0xf] }
  0xd8   : > { %406 = vmatpush.bf16.msra.mxu0 %v552_v31  ;;  %419 = vmatpush.bf16.msra.mxu1 %v556_v32 }
  0xdd   : > { %v569_v34 = vld [vmem:[#allocation2 + $0x8] sm:$0xf0]  ;;  %v541_v36 = vld [vmem:[#allocation2 + $0xc] sm:$0xf0] }
  0xde   : > { %v540_v27 = vor.u32 %v569_v34, %v539_v33  ;;  %v544_v37 = vor.u32 %v568_v35, %v541_v36 }
  0xe0   : > { %407 = vmatpush.bf16.msra.mxu0 %v540_v27  ;;  %420 = vmatpush.bf16.msra.mxu1 %v544_v37 }
  0xe3   : > { %561 = vmatmul.msk.bf16.vlgmr.msra.gmra.mxu0 %vm386_vm10, %v329_v22  ;;  %562 = vmatmul.msk.bf16.vlgmr.msra.gmra.mxu1 %vm386_vm10, %v329_v22 }
 0x155   : > { %v435_v38 = vpop.f32.mrf.mxu2 }
 0x156   : > { %v436_v39 = vadd.f32 %v435_v38, %v344_v28 }
 0x158   : > { %441 = vst [vmem:[%s188_s27 + $0x10] sm:$0xff] %v436_v39 }
 0x15d   : > { %v437_v40 = vpop.f32.mrf.mxu2 }
 0x160   : > { %v409_v41 = vpop.f32.mrf.mxu0  ;;  %v422_v42 = vpop.f32.mrf.mxu1 }
 0x161   : > { %v410_v43 = vadd.f32 %v409_v41, %v344_v28  ;;  %v423_v44 = vadd.f32 %v422_v42, %v344_v28 }
 0x163   : > { %439 = vst [vmem:[%s188_s27] sm:$0xff] %v410_v43 }
 0x164   : > { %440 = vst [vmem:[%s188_s27 + $0x8] sm:$0xff] %v423_v44 }
 0x165   : > { %690 = shalt.err (!%p687_p4)
}
 0x166   : > { %578 = dma.vmem_to_hbm [thread:$0]  (%p810_p11), %s457_s5, 384, %s459_s23, %s443_s6  }
 0x168   : > { %v411_v45 = vpop.f32.mrf.mxu0  ;;  %v424_v46 = vpop.f32.mrf.mxu1 }
 0x169 PF: > { %s470_s26 = sand.u32 1, %s717_s12   ;;  %p945_p7 = scmp.ge.s32.totalorder %s729_s15, 2 }
 0x16a   : > { %s471_s19 = scalar_lea.sflag [#allocation5], %s470_s26 }
 0x16b   : > { %p585_p5 = pnand %p945_p7, %p814_p12 }
 0x16d   : > { %p586_p8 = pneg %p585_p5 }
 0x16f   : > { %712 = dma.done.wait (%p586_p8), %s471_s19, 384  }
 0x170   : > { %714 = vsyncadd (%p586_p8), %s471_s19, 4294966912  ;;  %p16_p11 = scmp.ge.s32.totalorder %s785_s18, 4   ;;  %s946_s12 = smov %s721_s13 }
 0x171   : > { %s947_s13 = smov %s725_s14  ;;  %s948_s14 = smov %s797_s21 }
 0x172   : > { %s949_s15 = smov %s785_s18  ;;  %18 = sbr.rel (!%p16_p11) target bundleno = 5 (0x5), region = 78 }
 0x177   :  { %477 = vsyncpa [#allocation4], 1 }
 0x178   :  { %479 = vsyncpa [#allocation4 + $0x1], 1 }
 0x179   :  { %480 = vsyncpa [#allocation5], 1 }
 0x17a   :  { %482 = vsyncpa [#allocation5 + $0x1], 1 }

</bundles_post_ra>
